<compile_context>
chip_gen: v6e
topology: v6e:2x2x1
jax: 0.10.0
libtpu: 0.0.40
codegen_flags: <defaults>
</compile_context>

<pallas_src>
import functools

import jax
import jax.numpy as jnp
from jax.experimental import pallas as pl
from jax.experimental.pallas import tpu as pltpu

IN_FEATURES = 784      # 1 * 28 * 28
HIDDEN = 128
NUM_CLASSES = 10
OUT_PAD = 128          # pad final width 10 -> 128 for lane-dense output stores


# ------------------------------ Pallas kernel -------------------------------

def _secureml_kernel(x_ref, w1_ref, b1_ref, w2_ref, b2_ref, w3_ref, b3_ref,
                     o_ref):
    # fc1: (tm, 784) @ (784, 128) on the MXU; bf16 operands, f32 accumulate.
    x = x_ref[...].astype(jnp.bfloat16)
    h = jnp.dot(x, w1_ref[...], preferred_element_type=jnp.float32)
    h = jnp.maximum(h + b1_ref[...], 0.0)                 # f32 epilogue
    # fc2: (tm, 128) @ (128, 128)
    h = jnp.dot(h.astype(jnp.bfloat16), w2_ref[...],
                preferred_element_type=jnp.float32)
    h = jnp.maximum(h + b2_ref[...], 0.0)
    # fc3 (output columns padded 10 -> 128 with zeros): (tm, 128) @ (128, 128)
    h = jnp.dot(h.astype(jnp.bfloat16), w3_ref[...],
                preferred_element_type=jnp.float32)
    h = jnp.maximum(h + b3_ref[...], 0.0)                 # ReLU on logits (as in spec)
    o_ref[...] = h.astype(o_ref.dtype)


def _pick_tm(m):
    """Big M tiles (>=512 when possible); collapse to one step for tiny batch."""
    if m <= 512:
        return m
    for t in (1024, 512, 256, 128, 64, 32, 16, 8):
        if m % t == 0:
            return t
    return m


def secureml_forward(prepared, x):
    """x: any shape flattening to (N, 784) (e.g. NCHW (N,1,28,28))."""
    n = x.shape[0]
    xf = x.reshape(n, -1).astype(jnp.float32)             # nn.Flatten
    assert xf.shape[1] == IN_FEATURES
    tm = _pick_tm(n)
    grid = (n // tm,)
    out = pl.pallas_call(
        _secureml_kernel,
        out_shape=jax.ShapeDtypeStruct((n, OUT_PAD), jnp.float32),
        grid=grid,
        in_specs=[
            pl.BlockSpec((tm, IN_FEATURES), lambda i: (i, 0)),     # x block
            pl.BlockSpec((IN_FEATURES, HIDDEN), lambda i: (0, 0)),  # W1
            pl.BlockSpec((1, HIDDEN), lambda i: (0, 0)),            # b1
            pl.BlockSpec((HIDDEN, HIDDEN), lambda i: (0, 0)),       # W2
            pl.BlockSpec((1, HIDDEN), lambda i: (0, 0)),            # b2
            pl.BlockSpec((HIDDEN, OUT_PAD), lambda i: (0, 0)),      # W3 (padded)
            pl.BlockSpec((1, OUT_PAD), lambda i: (0, 0)),           # b3 (padded)
        ],
        out_specs=pl.BlockSpec((tm, OUT_PAD), lambda i: (i, 0)),
        compiler_params=pltpu.CompilerParams(
            dimension_semantics=("parallel",),
            vmem_limit_bytes=32 * 1024 * 1024,   # explicit budget (v7x-safe)
        ),
    )(xf, prepared["w1"], prepared["b1"], prepared["w2"], prepared["b2"],
      prepared["w3"], prepared["b3"])
    return out[:, :NUM_CLASSES]


# --------------------------- parameters / glue ------------------------------

def init_params(key):
    """PyTorch nn.Linear-style init: U(-1/sqrt(fan_in), 1/sqrt(fan_in))."""
    ks = jax.random.split(key, 6)

    def u(k, shape, fan_in):
        bound = 1.0 / float(fan_in) ** 0.5
        return jax.random.uniform(k, shape, jnp.float32, -bound, bound)

    return {
        "fc1_w": u(ks[0], (HIDDEN, IN_FEATURES), IN_FEATURES),  # PyTorch (out, in)
        "fc1_b": u(ks[1], (HIDDEN,), IN_FEATURES),
        "fc2_w": u(ks[2], (HIDDEN, HIDDEN), HIDDEN),
        "fc2_b": u(ks[3], (HIDDEN,), HIDDEN),
        "fc3_w": u(ks[4], (NUM_CLASSES, HIDDEN), HIDDEN),
        "fc3_b": u(ks[5], (NUM_CLASSES,), HIDDEN),
    }


def prepare_params(params):
    """One-time: transpose to (in, out), cast MXU weights to bf16, pad fc3 to
    128 output lanes, reshape biases to (1, N) f32 rows."""
    w3 = jnp.zeros((HIDDEN, OUT_PAD), jnp.float32)
    w3 = w3.at[:, :NUM_CLASSES].set(params["fc3_w"].T)
    b3 = jnp.zeros((1, OUT_PAD), jnp.float32)
    b3 = b3.at[0, :NUM_CLASSES].set(params["fc3_b"])
    return {
        "w1": params["fc1_w"].T.astype(jnp.bfloat16),
        "b1": params["fc1_b"].reshape(1, HIDDEN).astype(jnp.float32),
        "w2": params["fc2_w"].T.astype(jnp.bfloat16),
        "b2": params["fc2_b"].reshape(1, HIDDEN).astype(jnp.float32),
        "w3": w3.astype(jnp.bfloat16),
        "b3": b3,
    }


if __name__ == "__main__":
    key = jax.random.PRNGKey(0)
    pkey, xkey = jax.random.split(key)
    params = init_params(pkey)
    prepared = prepare_params(params)

    # SecureML is the MNIST MLP: Flatten expects 784 features -> (N, 1, 28, 28).
    x = jax.random.normal(xkey, (2, 1, 28, 28), jnp.float32)

    fwd = jax.jit(functools.partial(secureml_forward, prepared))
    out = jax.block_until_ready(fwd(x))
    assert out.shape == (2, NUM_CLASSES) and out.dtype == jnp.float32
    print("KERNEL_OK")
</pallas_src>

<mosaic_0001>
module attributes {stable_mosaic.version = 11 : i64} {
  func.func @_secureml_kernel(%arg0: i32, %arg1: memref<2x784xf32, #tpu.memory_space<vmem>>, %arg2: memref<784x128xbf16, #tpu.memory_space<vmem>>, %arg3: memref<1x128xf32, #tpu.memory_space<vmem>>, %arg4: memref<128x128xbf16, #tpu.memory_space<vmem>>, %arg5: memref<1x128xf32, #tpu.memory_space<vmem>>, %arg6: memref<128x128xbf16, #tpu.memory_space<vmem>>, %arg7: memref<1x128xf32, #tpu.memory_space<vmem>>, %arg8: memref<2x128xf32, #tpu.memory_space<vmem>>) attributes {dimension_semantics = [#tpu.dimension_semantics<parallel>], iteration_bounds = array<i64: 1>, scalar_prefetch = 0 : i64, scratch_operands = 0 : i64, tpu.core_type = #tpu.core_type<tc>, window_params = [{transform_indices = @transform_0, window_bounds = array<i64: 2, 784>}, {pipeline_mode = #tpu.pipeline_mode<synchronous>, transform_indices = @transform_1, window_bounds = array<i64: 784, 128>}, {pipeline_mode = #tpu.pipeline_mode<synchronous>, transform_indices = @transform_2, window_bounds = array<i64: 1, 128>}, {pipeline_mode = #tpu.pipeline_mode<synchronous>, transform_indices = @transform_3, window_bounds = array<i64: 128, 128>}, {pipeline_mode = #tpu.pipeline_mode<synchronous>, transform_indices = @transform_4, window_bounds = array<i64: 1, 128>}, {pipeline_mode = #tpu.pipeline_mode<synchronous>, transform_indices = @transform_5, window_bounds = array<i64: 128, 128>}, {pipeline_mode = #tpu.pipeline_mode<synchronous>, transform_indices = @transform_6, window_bounds = array<i64: 1, 128>}, {transform_indices = @transform_7, window_bounds = array<i64: 2, 128>}]} {
    %c0 = arith.constant 0 : index
    %c0_0 = arith.constant 0 : index
    %0 = vector.load %arg1[%c0, %c0_0] : memref<2x784xf32, #tpu.memory_space<vmem>>, vector<2x784xf32>
    %1 = arith.truncf %0 : vector<2x784xf32> to vector<2x784xbf16>
    %c0_1 = arith.constant 0 : index
    %c0_2 = arith.constant 0 : index
    %2 = vector.load %arg2[%c0_1, %c0_2] : memref<784x128xbf16, #tpu.memory_space<vmem>>, vector<784x128xbf16>
    %cst = arith.constant dense<0.000000e+00> : vector<2x128xf32>
    %3 = tpu.matmul %1, %2, %cst {dimension_numbers = #tpu.dot_dimension_numbers<[1], [0], [0], [1], [0, 0, 1, 1], [], []>} : vector<2x784xbf16>, vector<784x128xbf16>, vector<2x128xf32> -> vector<2x128xf32>
    %c0_3 = arith.constant 0 : index
    %c0_4 = arith.constant 0 : index
    %4 = vector.load %arg3[%c0_3, %c0_4] : memref<1x128xf32, #tpu.memory_space<vmem>>, vector<1x128xf32>
    %5 = vector.broadcast %4 : vector<1x128xf32> to vector<2x128xf32>
    %6 = arith.addf %3, %5 : vector<2x128xf32>
    %cst_5 = arith.constant 0.000000e+00 : f32
    %7 = vector.broadcast %cst_5 : f32 to vector<2x128xf32>
    %8 = arith.maximumf %6, %7 : vector<2x128xf32>
    %9 = arith.truncf %8 : vector<2x128xf32> to vector<2x128xbf16>
    %c0_6 = arith.constant 0 : index
    %c0_7 = arith.constant 0 : index
    %10 = vector.load %arg4[%c0_6, %c0_7] : memref<128x128xbf16, #tpu.memory_space<vmem>>, vector<128x128xbf16>
    %cst_8 = arith.constant dense<0.000000e+00> : vector<2x128xf32>
    %11 = tpu.matmul %9, %10, %cst_8 {dimension_numbers = #tpu.dot_dimension_numbers<[1], [0], [0], [1], [0, 0, 1, 1], [], []>} : vector<2x128xbf16>, vector<128x128xbf16>, vector<2x128xf32> -> vector<2x128xf32>
    %c0_9 = arith.constant 0 : index
    %c0_10 = arith.constant 0 : index
    %12 = vector.load %arg5[%c0_9, %c0_10] : memref<1x128xf32, #tpu.memory_space<vmem>>, vector<1x128xf32>
    %13 = vector.broadcast %12 : vector<1x128xf32> to vector<2x128xf32>
    %14 = arith.addf %11, %13 : vector<2x128xf32>
    %cst_11 = arith.constant 0.000000e+00 : f32
    %15 = vector.broadcast %cst_11 : f32 to vector<2x128xf32>
    %16 = arith.maximumf %14, %15 : vector<2x128xf32>
    %17 = arith.truncf %16 : vector<2x128xf32> to vector<2x128xbf16>
    %c0_12 = arith.constant 0 : index
    %c0_13 = arith.constant 0 : index
    %18 = vector.load %arg6[%c0_12, %c0_13] : memref<128x128xbf16, #tpu.memory_space<vmem>>, vector<128x128xbf16>
    %cst_14 = arith.constant dense<0.000000e+00> : vector<2x128xf32>
    %19 = tpu.matmul %17, %18, %cst_14 {dimension_numbers = #tpu.dot_dimension_numbers<[1], [0], [0], [1], [0, 0, 1, 1], [], []>} : vector<2x128xbf16>, vector<128x128xbf16>, vector<2x128xf32> -> vector<2x128xf32>
    %c0_15 = arith.constant 0 : index
    %c0_16 = arith.constant 0 : index
    %20 = vector.load %arg7[%c0_15, %c0_16] : memref<1x128xf32, #tpu.memory_space<vmem>>, vector<1x128xf32>
    %21 = vector.broadcast %20 : vector<1x128xf32> to vector<2x128xf32>
    %22 = arith.addf %19, %21 : vector<2x128xf32>
    %cst_17 = arith.constant 0.000000e+00 : f32
    %23 = vector.broadcast %cst_17 : f32 to vector<2x128xf32>
    %24 = arith.maximumf %22, %23 : vector<2x128xf32>
    %c0_18 = arith.constant 0 : index
    %c0_19 = arith.constant 0 : index
    %25 = vector.load %arg8[%c0_18, %c0_19] : memref<2x128xf32, #tpu.memory_space<vmem>>, vector<2x128xf32>
    tpu.vector_store %arg8[%c0_18, %c0_19], %24 {strides = array<i32>} : memref<2x128xf32, #tpu.memory_space<vmem>>, vector<2x128xf32>,
    return
  }
  func.func @transform_0(%arg0: i32) -> (i32, i32) {
    %c0_i32 = arith.constant 0 : i32
    %c0_i32_0 = arith.constant 0 : i32
    return %arg0, %c0_i32 : i32, i32
  }
  func.func @transform_1(%arg0: i32) -> (i32, i32) {
    %c0_i32 = arith.constant 0 : i32
    %c0_i32_0 = arith.constant 0 : i32
    %c0_i32_1 = arith.constant 0 : i32
    return %c0_i32, %c0_i32_0 : i32, i32
  }
  func.func @transform_2(%arg0: i32) -> (i32, i32) {
    %c0_i32 = arith.constant 0 : i32
    %c0_i32_0 = arith.constant 0 : i32
    %c0_i32_1 = arith.constant 0 : i32
    return %c0_i32, %c0_i32_0 : i32, i32
  }
  func.func @transform_3(%arg0: i32) -> (i32, i32) {
    %c0_i32 = arith.constant 0 : i32
    %c0_i32_0 = arith.constant 0 : i32
    %c0_i32_1 = arith.constant 0 : i32
    return %c0_i32, %c0_i32_0 : i32, i32
  }
  func.func @transform_4(%arg0: i32) -> (i32, i32) {
    %c0_i32 = arith.constant 0 : i32
    %c0_i32_0 = arith.constant 0 : i32
    %c0_i32_1 = arith.constant 0 : i32
    return %c0_i32, %c0_i32_0 : i32, i32
  }
  func.func @transform_5(%arg0: i32) -> (i32, i32) {
    %c0_i32 = arith.constant 0 : i32
    %c0_i32_0 = arith.constant 0 : i32
    %c0_i32_1 = arith.constant 0 : i32
    return %c0_i32, %c0_i32_0 : i32, i32
  }
  func.func @transform_6(%arg0: i32) -> (i32, i32) {
    %c0_i32 = arith.constant 0 : i32
    %c0_i32_0 = arith.constant 0 : i32
    %c0_i32_1 = arith.constant 0 : i32
    return %c0_i32, %c0_i32_0 : i32, i32
  }
  func.func @transform_7(%arg0: i32) -> (i32, i32) {
    %c0_i32 = arith.constant 0 : i32
    %c0_i32_0 = arith.constant 0 : i32
    return %arg0, %c0_i32 : i32, i32
  }
}

</mosaic_0001>

<bundles_post_ra>
// kernel: secureml_forward.1
= control target key start
LH: loop header
LB: loop body
LE: loop exit
PB: predicated region body
PF: predicated region fallthrough
CT: control target
= control target key end

     0   :  { %12 = vsyncpa [#allocation3], 0  ;;  %s1358_s0 = inlined_call_operand.vmem [shape: f32[2,784], index: 0, kind: input, shape index: {}]   ;;  %s1359_s1 = inlined_call_operand.hbm [shape: bf16[784,128], index: 1, kind: input, shape index: {}]   ;;  %s1360_s2 = inlined_call_operand.vmem [shape: f32[1,128], index: 2, kind: input, shape index: {}]   ;;  %s1361_s3 = inlined_call_operand.vmem [shape: bf16[128,128], index: 3, kind: input, shape index: {}]   ;;  %s1362_s4 = inlined_call_operand.vmem [shape: f32[1,128], index: 4, kind: input, shape index: {}]   ;;  %s1363_s5 = inlined_call_operand.vmem [shape: bf16[128,128], index: 5, kind: input, shape index: {}]   ;;  %s1364_s6 = inlined_call_operand.vmem [shape: f32[1,128], index: 6, kind: input, shape index: {}]   ;;  %s1365_s7 = inlined_call_operand.hbm [shape: f32[2,128], index: 7, kind: output, shape index: {}]  }
   0x1   :  { %13 = vsyncpa [#allocation4], 0  ;;  %s1218_s24 = smov [#allocation2]  }
   0x2   :  { %s21_s25 = sshll.u32 %s1218_s24, 4  ;;  %s22_s25 = int_to_ptr.vmem [resolvable:$true] %s21_s25 }
   0x3   :  { %s1182_s26 = scalar_lea.vmem %s22_s25, 6272  ;;  %p1187_p1 = scmp.lt.s32.totalorder %s22_s25, %s22_s25 }
   0x4   :  { %p1183_p0 = scmp.ne.s32.totalorder %s22_s25, %s1182_s26  ;;  %p1188_p2 = scmp.lt.s32.totalorder %s1182_s26, %s1182_s26 }
   0x6   :  { %p1189_p3 = por %p1188_p2, %p1187_p1 }
   0x8   :  { %p1190_p4 = pnand %p1189_p3, %p1183_p0 }
   0xa   :  { %1193 = shalt.err (!%p1190_p4)
}
   0xb   :  { %s1219_s27 = smov 64   ;;  %s1220_s28 = smov 4  }
   0xc   :  { %27 = dma.hbm_to_vmem [thread:$0]  %s1359_s1, 6272, %s22_s25, [#allocation3], %s1219_s27, %s1219_s27, %s1220_s28  }
   0xd   :  { %1214 = dma.done.wait [#allocation3], 6272  }
   0xe   :  { %1215 = vsyncadd [#allocation3], 4294961024  ;;  %v1107_v0 = vld [vmem:[#allocation2 + $0x78] sm:$0xff]   ;;  %v1111_v4 = vld [vmem:[#allocation2 + $0x70] sm:$0xff]   ;;  %v1221_v21 = vmov 1983009808   ;;  %v50_v23 = vlaneseq }
   0xf   :  { %v1108_v1 = vld [vmem:[#allocation2 + $0x38] sm:$0xff]   ;;  %968 = vmatprep.subr.bf16.mxu0 %v1107_v0  ;;  %v1112_v5 = vld [vmem:[#allocation2 + $0x30] sm:$0xff]   ;;  %v1115_v8 = vld [vmem:[#allocation2 + $0x68] sm:$0xff]   ;;  %v48_v22 = vunpack.c.l.s4 %v1221_v21  ;;  %v1222_v45 = vmov 0.0   ;;  %vm1223_vm0 = vmmov 0   ;;  %vm492_vm1 = vcmask 130048  }
  0x10   :  { %v1109_v2 = vld [vmem:[#allocation2 + $0xf8] sm:$0xff]   ;;  %969 = vmatpush3.bf16.msra.mxu0 %v1108_v1  ;;  %v1113_v6 = vld [vmem:[#allocation2 + $0xf0] sm:$0xff]   ;;  %v1116_v9 = vld [vmem:[#allocation2 + $0x28] sm:$0xff]   ;;  %v51_v29 = vshrl.u32 %v50_v23, 7  ;;  %s1224_s21 = smov [#allocation5]  }
  0x11   :  { %v1110_v3 = vld [vmem:[#allocation2 + $0xb8] sm:$0xff]   ;;  %990 = vmatprep.subr.bf16.mxu1 %v1109_v2  ;;  %970 = vmatprep.subr.bf16.mxu0 %v1111_v4  ;;  %v1114_v7 = vld [vmem:[#allocation2 + $0xb0] sm:$0xff]   ;;  %v1117_v10 = vld [vmem:[#allocation2 + $0xe8] sm:$0xff]   ;;  %v49_v28 = vunpack.c.0.s8 %v48_v22 }
  0x12   :  { %991 = vmatpush3.bf16.msra.mxu1 %v1110_v3  ;;  %v1118_v11 = vld [vmem:[#allocation2 + $0xa8] sm:$0xff]   ;;  %v1119_v12 = vld [vmem:[#allocation2 + $0x60] sm:$0xff]   ;;  %v1123_v16 = vld [vmem:[#allocation2 + $0x58] sm:$0xff]  }
  0x13   :  { %992 = vmatprep.subr.bf16.mxu1 %v1113_v6  ;;  %v1120_v13 = vld [vmem:[#allocation2 + $0x20] sm:$0xff]   ;;  %v1124_v17 = vld [vmem:[#allocation2 + $0x18] sm:$0xff]   ;;  %v1127_v20 = vld [vmem:[#allocation2 + $0x50] sm:$0xff]   ;;  %v52_v34 = vsub.s32 %v49_v28, %v51_v29 }
  0x14   :  { %971 = vmatpush3.bf16.msra.mxu0 %v1112_v5  ;;  %v1121_v14 = vld [vmem:[#allocation2 + $0xe0] sm:$0xff]   ;;  %v1125_v18 = vld [vmem:[#allocation2 + $0xd8] sm:$0xff]   ;;  %v1128_v24 = vld [vmem:[#allocation2 + $0x10] sm:$0xff]  }
  0x15   :  { %972 = vmatprep.subr.bf16.mxu0 %v1115_v8  ;;  %v1122_v15 = vld [vmem:[#allocation2 + $0xa0] sm:$0xff]   ;;  %v1126_v19 = vld [vmem:[#allocation2 + $0x98] sm:$0xff]   ;;  %v1129_v25 = vld [vmem:[#allocation2 + $0xd0] sm:$0xff]  }
  0x16   :  { %993 = vmatpush3.bf16.msra.mxu1 %v1114_v7  ;;  %v1130_v26 = vld [vmem:[#allocation2 + $0x90] sm:$0xff]   ;;  %v1131_v27 = vld [vmem:[#allocation2 + $0x48] sm:$0xff]   ;;  %v1135_v33 = vld [vmem:[#allocation2 + $0x40] sm:$0xff]  }
  0x17   :  { %994 = vmatprep.subr.bf16.mxu1 %v1117_v10  ;;  %v1132_v30 = vld [vmem:[#allocation2 + $0x8] sm:$0xff]   ;;  %v1136_v35 = vld [vmem:[#allocation2] sm:$0xff]   ;;  %v1139_v41 = vld [vmem:[#allocation2 + $0x178] sm:$0xff]  }
  0x18   :  { %973 = vmatpush3.bf16.msra.mxu0 %v1116_v9  ;;  %v1133_v31 = vld [vmem:[#allocation2 + $0xc8] sm:$0xff]   ;;  %v1137_v36 = vld [vmem:[#allocation2 + $0xc0] sm:$0xff]   ;;  %v1141_v48 = vld [vmem:[#allocation2 + $0x138] sm:$0xff]  }
  0x19   :  { %974 = vmatprep.subr.bf16.mxu0 %v1119_v12  ;;  %v1134_v32 = vld [vmem:[#allocation2 + $0x88] sm:$0xff]   ;;  %v42_v37 = vld [vmem:[%s1358_s0] sm:$0xff]  ;;  %v1142_v50 = vld [vmem:[#allocation2 + $0x170] sm:$0xff]  }
  0x1a   :  { %995 = vmatpush3.bf16.msra.mxu1 %v1118_v11  ;;  %v53_v38 = vrot.slane %v42_v37, %v52_v34  ;;  %v1138_v39 = vld [vmem:[#allocation2 + $0x80] sm:$0xff]   ;;  %v46_v40 = vcombine.high %v42_v37, %v42_v37  ;;  %v1143_v52 = vld [vmem:[#allocation2 + $0x130] sm:$0xff]   ;;  %v1144_v53 = vld [vmem:[#allocation2 + $0x168] sm:$0xff]  }
  0x1b   :  { %996 = vmatprep.subr.bf16.mxu1 %v1121_v14  ;;  %v1145_v54 = vld [vmem:[#allocation2 + $0x128] sm:$0xff]   ;;  %v1146_v55 = vld [vmem:[#allocation2 + $0x160] sm:$0xff]   ;;  %v1148_v57 = vld [vmem:[#allocation2 + $0x158] sm:$0xff]  }
  0x1c   :  { %975 = vmatpush3.bf16.msra.mxu0 %v1120_v13  ;;  %v61_v42 = vcombine.high %v53_v38, %v53_v38  ;;  %v60_v43 = vrot.slane %v46_v40, %v52_v34  ;;  %v86_v44 = vpack.c.bf16 %v53_v38, %v53_v38  ;;  %v1147_v56 = vld [vmem:[#allocation2 + $0x120] sm:$0xff]   ;;  %v43_v59 = vld [vmem:[%s1358_s0 + $0x8] sm:$0x3f]  ;;  %v1149_v60 = vld [vmem:[#allocation2 + $0x118] sm:$0xff]  }
  0x1d   :  { %976 = vmatprep.subr.bf16.mxu0 %v1123_v16  ;;  %v1156_v58 = vld [vmem:[#allocation2 + $0x180] sm:$0xff]   ;;  %v63_v61 = vcombine.high %v43_v59, %v43_v59  ;;  %v70_v62 = vrot.slane %v43_v59, %v52_v34  ;;  %v1150_v63 = vld [vmem:[#allocation2 + $0x150] sm:$0xff]   ;;  %v1152_v5 = vld [vmem:[#allocation2 + $0x148] sm:$0xff]  }
  0x1e   :  { %997 = vmatpush3.bf16.msra.mxu1 %v1122_v15  ;;  %v87_v46 = vpack.c.bf16 %v61_v42, %v61_v42  ;;  %v62_v47 = vcombine.high %v60_v43, %v60_v43  ;;  %v88_v49 = vpack.c.bf16 %v60_v43, %v60_v43  ;;  %v1151_v2 = vld [vmem:[#allocation2 + $0x110] sm:$0xff]   ;;  %v1153_v6 = vld [vmem:[#allocation2 + $0x108] sm:$0xff]   ;;  %v1154_v7 = vld [vmem:[#allocation2 + $0x140] sm:$0xff]  }
  0x1f   :  { %998 = vmatprep.subr.bf16.mxu1 %v1125_v18  ;;  %v77_v0 = vrot.slane %v63_v61, %v52_v34  ;;  %v78_v1 = vcombine.high %v70_v62, %v70_v62  ;;  %v1155_v8 = vld [vmem:[#allocation2 + $0x100] sm:$0xff]   ;;  %v90_v9 = vpack.c.bf16 %v70_v62, %v70_v62  ;;  %v1158_v10 = vld [vmem:[%s1361_s3 + $0x38] sm:$0xff]   ;;  %v1159_v11 = vld [vmem:[%s1361_s3 + $0x30] sm:$0xff]  }
  0x20   :  { %977 = vmatpush3.bf16.msra.mxu0 %v1124_v17  ;;  %528 = vmatprep.mubr.bf16.mxu0 %v87_v46  ;;  %v89_v51 = vpack.c.bf16 %v62_v47, %v62_v47  ;;  %v1160_v12 = vld [vmem:[%s1361_s3 + $0x28] sm:$0xff]   ;;  %v1161_v13 = vld [vmem:[%s1361_s3 + $0x20] sm:$0xff]   ;;  %v1162_v14 = vld [vmem:[%s1361_s3 + $0x18] sm:$0xff]  }
  0x21   :  { %978 = vmatprep.subr.bf16.mxu0 %v1127_v20  ;;  %v91_v3 = vpack.c.bf16 %v78_v1, %v78_v1  ;;  %v92_v4 = vpack.c.bf16 %v77_v0, %v77_v0  ;;  %v1163_v15 = vld [vmem:[%s1361_s3 + $0x10] sm:$0xff]   ;;  %v1164_v16 = vld [vmem:[%s1361_s3 + $0x8] sm:$0xff]   ;;  %v1165_v17 = vld [vmem:[%s1361_s3] sm:$0xff]  }
  0x22   :  { %999 = vmatpush3.bf16.msra.mxu1 %v1126_v19  ;;  %568 = vmatprep.mubr.bf16.mxu1 %v89_v51  ;;  %v1166_v18 = vld [vmem:[%s1363_s5 + $0x38] sm:$0xff]   ;;  %v1167_v19 = vld [vmem:[%s1363_s5 + $0x30] sm:$0xff]   ;;  %v1168_v20 = vld [vmem:[%s1363_s5 + $0x28] sm:$0xff]  }
  0x23   :  { %1000 = vmatprep.subr.bf16.mxu1 %v1129_v25  ;;  %v1169_v21 = vld [vmem:[%s1363_s5 + $0x20] sm:$0xff]   ;;  %v1170_v22 = vld [vmem:[%s1363_s5 + $0x18] sm:$0xff]   ;;  %v1171_v23 = vld [vmem:[%s1363_s5 + $0x10] sm:$0xff]  }
  0x24   :  { %979 = vmatpush3.bf16.msra.mxu0 %v1128_v24  ;;  %v899_v37 = vld [vmem:[%s1360_s2] ss:$0 sm:$0xff]  ;;  %v1172_v51 = vld [vmem:[%s1363_s5 + $0x8] sm:$0xff]  }
  0x25   :  { %980 = vmatprep.subr.bf16.mxu0 %v1131_v27 }
  0x26   :  { %1001 = vmatpush3.bf16.msra.mxu1 %v1130_v26 }
  0x27   :  { %1002 = vmatprep.subr.bf16.mxu1 %v1133_v31 }
  0x28   :  { %981 = vmatpush3.bf16.msra.mxu0 %v1132_v30 }
  0x29   :  { %982 = vmatprep.subr.bf16.mxu0 %v1135_v33 }
  0x2a   :  { %1003 = vmatpush3.bf16.msra.mxu1 %v1134_v32 }
  0x2b   :  { %1004 = vmatprep.subr.bf16.mxu1 %v1137_v36 }
  0x2c   :  { %983 = vmatpush3.bf16.msra.mxu0 %v1136_v35 }
  0x2d   :  { %1012 = vmatprep.subr.bf16.mxu0 %v1139_v41 }
  0x2e   :  { %1005 = vmatpush3.bf16.msra.mxu1 %v1138_v39 }
  0x2f   :  { %1054 = vmatprep.subr.bf16.mxu1 %v1222_v45  ;;  %529 = vmatmul.mubr.bf16.vlgmr.msra.gmra.mxu0 %v86_v44 }
  0x30   :  { %1013 = vmatpush3.bf16.msra.mxu0 %v1141_v48  ;;  %608 = vmatprep.mubr.bf16.mxu0 %v91_v3 }
  0x31   :  { %569 = vmatmul.mubr.bf16.vlgmr.msra.gmra.mxu1 %v88_v49  ;;  %1014 = vmatprep.subr.bf16.mxu0 %v1142_v50 }
  0x32   :  { %1056 = vmatprep.mubr.msk.bf16.mxu1 %vm1223_vm0, %v1222_v45  ;;  %1055 = vmatpush3.bf16.msra.mxu1 %v1156_v58 }
  0x33   :  { %1060 = vmatprep.subr.bf16.mxu1 %v1222_v45 }
  0x34   :  { %1015 = vmatpush3.bf16.msra.mxu0 %v1143_v52  ;;  %v1173_v52 = vld [vmem:[%s1363_s5] sm:$0xff]   ;;  %s890_s5 = sshll.u32 %s1224_s21, 4  ;;  %s891_s5 = int_to_ptr.vmem [resolvable:$true] %s890_s5 }
  0x35   :  { %1016 = vmatprep.subr.bf16.mxu0 %v1144_v53  ;;  %v950_v53 = vld [vmem:[%s1362_s4] ss:$0 sm:$0xff]  ;;  %s1194_s4 = scalar_lea.vmem %s891_s5, 32  ;;  %p1199_p6 = scmp.lt.s32.totalorder %s891_s5, %s891_s5 }
  0x36   :  { %p1195_p5 = scmp.ne.s32.totalorder %s891_s5, %s1194_s4  ;;  %p1200_p7 = scmp.lt.s32.totalorder %s1194_s4, %s1194_s4 }
  0x38   :  { %1017 = vmatpush3.bf16.msra.mxu0 %v1145_v54  ;;  %p1201_p8 = por %p1200_p7, %p1199_p6 }
  0x39   :  { %1018 = vmatprep.subr.bf16.mxu0 %v1146_v55  ;;  %1057 = vmatmul.mubr.msk.bf16.vlgmr.msra.gmra.mxu1 %vm492_vm1, %v92_v4 }
  0x3a   :  { %1076 = vmatprep.mubr.msk.bf16.mxu1 %vm1223_vm0, %v1222_v45  ;;  %1061 = vmatpush3.bf16.msra.mxu1 %v1158_v10  ;;  %p1202_p9 = pnand %p1201_p8, %p1195_p5 }
  0x3b   :  { %1062 = vmatprep.subr.bf16.mxu1 %v1222_v45 }
  0x3c   :  { %1019 = vmatpush3.bf16.msra.mxu0 %v1147_v56 }
  0x3d   :  { %1020 = vmatprep.subr.bf16.mxu0 %v1148_v57 }
  0x3e   :  { %1063 = vmatpush3.bf16.msra.mxu1 %v1159_v11 }
  0x3f   :  { %1064 = vmatprep.subr.bf16.mxu1 %v1222_v45 }
  0x40   :  { %1021 = vmatpush3.bf16.msra.mxu0 %v1149_v60 }
  0x41   :  { %1022 = vmatprep.subr.bf16.mxu0 %v1150_v63 }
  0x42   :  { %1065 = vmatpush3.bf16.msra.mxu1 %v1160_v12 }
  0x43   :  { %1066 = vmatprep.subr.bf16.mxu1 %v1222_v45 }
  0x44   :  { %1023 = vmatpush3.bf16.msra.mxu0 %v1151_v2 }
  0x45   :  { %1024 = vmatprep.subr.bf16.mxu0 %v1152_v5 }
  0x46   :  { %1067 = vmatpush3.bf16.msra.mxu1 %v1161_v13 }
  0x47   :  { %1068 = vmatprep.subr.bf16.mxu1 %v1222_v45 }
  0x48   :  { %1025 = vmatpush3.bf16.msra.mxu0 %v1153_v6 }
  0x49   :  { %1026 = vmatprep.subr.bf16.mxu0 %v1154_v7 }
  0x4a   :  { %1069 = vmatpush3.bf16.msra.mxu1 %v1162_v14 }
  0x4b   :  { %1070 = vmatprep.subr.bf16.mxu1 %v1222_v45 }
  0x4c   :  { %1027 = vmatpush3.bf16.msra.mxu0 %v1155_v8 }
  0x4d   :  { %1080 = vmatprep.subr.bf16.mxu0 %v1222_v45 }
  0x4e   :  { %1071 = vmatpush3.bf16.msra.mxu1 %v1163_v15 }
  0x4f   :  { %609 = vmatmul.mubr.bf16.vlgmr.msra.gmra.mxu0 %v90_v9  ;;  %1072 = vmatprep.subr.bf16.mxu1 %v1222_v45 }
  0x50   :  { %1096 = vmatprep.mubr.msk.bf16.mxu0 %vm1223_vm0, %v1222_v45  ;;  %1081 = vmatpush3.bf16.msra.mxu0 %v1166_v18 }
  0x51   :  { %1082 = vmatprep.subr.bf16.mxu0 %v1222_v45 }
  0x52   :  { %1073 = vmatpush3.bf16.msra.mxu1 %v1164_v16 }
  0x53   :  { %1074 = vmatprep.subr.bf16.mxu1 %v1222_v45 }
  0x54   :  { %1083 = vmatpush3.bf16.msra.mxu0 %v1167_v19 }
  0x55   :  { %1084 = vmatprep.subr.bf16.mxu0 %v1222_v45 }
  0x56   :  { %1075 = vmatpush3.bf16.msra.mxu1 %v1165_v17 }
  0x58   :  { %1085 = vmatpush3.bf16.msra.mxu0 %v1168_v20 }
  0x59   :  { %1086 = vmatprep.subr.bf16.mxu0 %v1222_v45 }
  0x5c   :  { %1087 = vmatpush3.bf16.msra.mxu0 %v1169_v21 }
  0x5d   :  { %1088 = vmatprep.subr.bf16.mxu0 %v1222_v45 }
  0x60   :  { %1089 = vmatpush3.bf16.msra.mxu0 %v1170_v22 }
  0x61   :  { %1090 = vmatprep.subr.bf16.mxu0 %v1222_v45 }
  0x64   :  { %1091 = vmatpush3.bf16.msra.mxu0 %v1171_v23 }
  0x65   :  { %1092 = vmatprep.subr.bf16.mxu0 %v1222_v45 }
  0x68   :  { %1093 = vmatpush3.bf16.msra.mxu0 %v1172_v51 }
  0x69   :  { %1094 = vmatprep.subr.bf16.mxu0 %v1222_v45  ;;  %v959_v45 = vld [vmem:[%s1364_s6] ss:$0 sm:$0xff] }
  0x6c   :  { %1095 = vmatpush3.bf16.msra.mxu0 %v1173_v52 }
  0xef   :  { %v984_v24 = vpop.f32.mrf.mxu0 }
  0xf1   :  { %v985_v25 = vpop.f32.mrf.mxu0  ;;  %v1006_v26 = vpop.f32.mrf.mxu1 }
  0xf2   :  { %v986_v36 = vadd.f32 %v985_v25, %v984_v24 }
  0xf3   :  { %v987_v27 = vpop.f32.mrf.mxu0  ;;  %v1007_v28 = vpop.f32.mrf.mxu1 }
  0xf4   :  { %v531_v38 = vadd.f32 %v986_v36, %v899_v37  ;;  %v1008_v39 = vadd.f32 %v1007_v28, %v1006_v26 }
  0xf5   :  { %v988_v29 = vpop.f32.mrf.mxu0  ;;  %v1009_v30 = vpop.f32.mrf.mxu1 }
  0xf6   :  { %v571_v42 = vadd.f32 %v1008_v39, %v531_v38 }
  0xf7   :  { %v1010_v31 = vpop.f32.mrf.mxu1 }
  0xf9   :  { %v650_v32 = vpop.f32.mrf.mxu1 }
  0xfb   :  { %v1058_v33 = vpop.f32.mrf.mxu1 }
  0xfd   :  { %v653_v34 = vpop.f32.mrf.mxu1 }
  0xff   :  { %v1059_v35 = vpop.f32.mrf.mxu1 }
 0x10f   :  { %v1028_v40 = vpop.f32.mrf.mxu0 }
 0x111   :  { %v1029_v41 = vpop.f32.mrf.mxu0 }
 0x112   :  { %v1030_v43 = vadd.f32 %v1029_v41, %v1028_v40 }
 0x113   :  { %v1031_v44 = vpop.f32.mrf.mxu0 }
 0x114   :  { %v611_v46 = vadd.f32 %v1030_v43, %v571_v42 }
 0x115   :  { %v1032_v47 = vpop.f32.mrf.mxu0 }
 0x116   :  { %v651_v48 = vadd.f32 %v650_v32, %v611_v46 }
 0x118   :  { %v656_v49 = vmax.f32 %v651_v48, 0.0 }
 0x11a   :  { %v657_v50 = vpack.c.bf16 %v656_v49, %v656_v49 }
 0x11c   :  { %1077 = vmatmul.mubr.bf16.vlgmr.msra.gmra.mxu1 %v657_v50 }
 0x1dc   :  { %v763_v54 = vpop.f32.mrf.mxu1 }
 0x1dd   :  { %v764_v55 = vadd.f32 %v950_v53, %v763_v54 }
 0x1de   :  { %v1078_v56 = vpop.f32.mrf.mxu1 }
 0x1df   :  { %v769_v57 = vmax.f32 %v764_v55, 0.0 }
 0x1e0   :  { %v766_v58 = vpop.f32.mrf.mxu1 }
 0x1e1   :  { %v770_v59 = vpack.c.bf16 %v769_v57, %v769_v57 }
 0x1e2   :  { %v1079_v60 = vpop.f32.mrf.mxu1 }
 0x1e3   :  { %1097 = vmatmul.mubr.bf16.vlgmr.msra.gmra.mxu0 %v770_v59 }
 0x2a3   :  { %v876_v61 = vpop.f32.mrf.mxu0 }
 0x2a4   :  { %v877_v62 = vadd.f32 %v959_v45, %v876_v61 }
 0x2a5   :  { %v1098_v63 = vpop.f32.mrf.mxu0 }
 0x2a6   :  { %v882_v0 = vmax.f32 %v877_v62, 0.0 }
 0x2a7   :  { %v879_v1 = vpop.f32.mrf.mxu0 }
 0x2a8   :  { %883 = vst [vmem:[#allocation5] sm:$0x3] %v882_v0 }
 0x2a9   :  { %v1099_v2 = vpop.f32.mrf.mxu0 }
 0x2aa   :  { %1205 = shalt.err (!%p1202_p9)
}
 0x2ab   :  { %893 = dma.vmem_to_hbm [thread:$0]  %s891_s5, 32, %s1365_s7, [#allocation4]  }
 0x2ac   :  { %1216 = dma.done.wait [#allocation4], 32  }
 0x2ad   :  { %1217 = vsyncadd [#allocation4], 4294967264 }
 0x2ae   :  { %897 = vsyncpa [#allocation3], 1 }
 0x2af   :  { %898 = vsyncpa [#allocation4], 1 }

</bundles_post_ra>
